<compile_context>
chip_gen: v7x
topology: tpu7x:2x2x1
jax: 0.10.0
libtpu: 0.0.40
codegen_flags: <defaults>
</compile_context>

<pallas_src>
import functools

import jax
import jax.numpy as jnp
from jax.experimental import pallas as pl
from jax.experimental.pallas import tpu as pltpu


def _round_up(x, m):
    return ((x + m - 1) // m) * m


# -----------------------------------------------------------------------------
# Kernel
# -----------------------------------------------------------------------------
def _set_embedding_kernel(n_h1, n_h2, n_set, d_in, d_out, mm_dtype,
                          x_ref, w_ref, b_ref, out_ref):
    """x_ref: (TB*N, D_in); w_ref: (L, P, P) mm_dtype (zero-padded);
    b_ref: (L, 1, P) f32 (zero-padded); out_ref: (TB, D_out)."""
    rows = x_ref.shape[0]
    tb = rows // n_set
    p = w_ref.shape[-1]

    x = x_ref[...]
    if x.dtype != mm_dtype:              # cast only if needed (no f32 round-trip)
        x = x.astype(mm_dtype)

    # ---- h1: per-set-element MLP, batched over all TB*N rows at once ----
    for li in range(n_h1):
        w = w_ref[li]                    # (P, P); padded rows/cols are zero
        if li == 0 and d_in < p:
            w = w[:d_in, :]              # first layer consumes the raw D_in cols
        y = jnp.dot(x, w, preferred_element_type=jnp.float32) + b_ref[li]
        if li < n_h1 - 1:
            x = jnp.maximum(y, 0.0).astype(mm_dtype)
        else:
            x = y                        # last h1 layer: no ReLU, keep f32 for pooling

    # ---- sum over the set dimension (torch dim=1; keepdim restored in wrapper) ----
    # (TB*N, P) -> (TB, N, P): leading-dim regroup only, last two dims untouched.
    k = x.reshape(tb, n_set, p).sum(axis=1)            # (TB, P), f32

    # ---- h2: MLP on the pooled representation ----
    for li in range(n_h2):
        w = w_ref[n_h1 + li]
        y = jnp.dot(k.astype(mm_dtype), w,
                    preferred_element_type=jnp.float32) + b_ref[n_h1 + li]
        k = jnp.maximum(y, 0.0) if li < n_h2 - 1 else y

    out_ref[...] = k[:, :d_out].astype(out_ref.dtype)


# -----------------------------------------------------------------------------
# Wrapper
# -----------------------------------------------------------------------------
_TARGET_ROWS = 1024          # per-step matmul rows (512-1024 per review)


def _pick_batch_tile(batch, n_set):
    """Batch tile: >=_TARGET_ROWS rows/step, sublane-aligned, and >=2 (preferably
    an even number of) grid steps so v7x's second TensorCore gets work."""
    if batch < 16:
        return batch                                    # tiny batch: single step
    tb = _round_up(max(8, pl.cdiv(_TARGET_ROWS, n_set)), 8)
    tb = min(tb, _round_up(pl.cdiv(batch, 2), 8))       # guarantee >= 2 steps
    steps = pl.cdiv(batch, tb)
    if steps > 1 and steps % 2 == 1:                    # prefer even step counts
        tb = _round_up(pl.cdiv(batch, steps + 1), 8)
    return max(8, tb)


def set_embedding_forward(knowledge, h1_params, h2_params, *,
                          mm_dtype=jnp.bfloat16):
    """knowledge: [B, N, D_in]; h*_params: lists of (W, b) with b shaped [1, D].

    Returns [B, 1, D_out]  (== h2(sum(h1(knowledge), dim=1, keepdim=True))).
    mm_dtype is the MXU operand dtype.  bf16 is a good default on v5e/v6e/v7x
    (all bf16-native MXUs); accumulation, bias add and ReLU stay in f32.
    Pass jnp.float32 for bit-exact results.
    """
    mm_dtype = jnp.dtype(mm_dtype)
    B, N, D_in = knowledge.shape
    n_h1, n_h2 = len(h1_params), len(h2_params)
    layers = list(h1_params) + list(h2_params)
    L = len(layers)
    D_out = int(layers[-1][0].shape[1])
    itemsize = knowledge.dtype.itemsize

    # ---- pack all weights / biases into a single operand each (one DMA, one
    #      resident buffer) instead of 2*L tiny per-layer operands. ----
    P = _round_up(max(max(int(w.shape[0]), int(w.shape[1])) for w, _ in layers), 8)
    w_pack = jnp.zeros((L, P, P), dtype=mm_dtype)
    b_pack = jnp.zeros((L, 1, P), dtype=jnp.float32)
    for i, (w, b) in enumerate(layers):
        w_pack = w_pack.at[i, : w.shape[0], : w.shape[1]].set(w.astype(mm_dtype))
        b2 = jnp.asarray(b, jnp.float32).reshape(1, -1)
        b_pack = b_pack.at[i, :, : b2.shape[1]].set(b2)

    # ---- batch tiling ----
    TB = _pick_batch_tile(B, N)
    B_pad = pl.cdiv(B, TB) * TB
    grid = (B_pad // TB,)
    ROWS = TB * N

    # ---- flatten to 2D wrapper-side (free reshape) so the kernel input block is
    #      a plain sublane-dense (TB*N, D_in) tile; pad batch rows if needed. ----
    x2d = knowledge.reshape(B * N, D_in)
    if B_pad != B:
        x2d = jnp.pad(x2d, ((0, (B_pad - B) * N), (0, 0)))

    # ---- VMEM budget: generation-aware cap (~3/4 of physical VMEM). ----
    try:
        vmem_cap = int(pltpu.get_tpu_info().vmem_capacity_bytes) * 3 // 4
    except Exception:
        vmem_cap = 48 << 20                             # safe on v7x (64 MiB)
    w_bytes = int(w_pack.size) * w_pack.dtype.itemsize
    b_bytes = int(b_pack.size) * b_pack.dtype.itemsize
    vmem_need = (2 * (ROWS * D_in * itemsize + TB * D_out * itemsize
                      + w_bytes + b_bytes)
                 + 4 * ROWS * P * 4)
    vmem_limit = int(min(max(2 * vmem_need, 4 << 20), vmem_cap))

    # ---- advisory cost estimate for the XLA scheduler ----
    flops = (2 * B * N * sum(int(w.shape[0]) * int(w.shape[1]) for w, _ in h1_params)
             + 2 * B * sum(int(w.shape[0]) * int(w.shape[1]) for w, _ in h2_params))
    bytes_accessed = (B * N * D_in * itemsize + B * D_out * itemsize
                      + w_bytes + b_bytes)
    cost = pl.CostEstimate(flops=int(flops), transcendentals=0,
                           bytes_accessed=int(bytes_accessed))

    kernel = functools.partial(_set_embedding_kernel,
                               n_h1, n_h2, N, D_in, D_out, mm_dtype)

    out = pl.pallas_call(
        kernel,
        out_shape=jax.ShapeDtypeStruct((B_pad, D_out), knowledge.dtype),
        grid_spec=pltpu.PrefetchScalarGridSpec(
            num_scalar_prefetch=0,
            grid=grid,
            in_specs=[
                pl.BlockSpec((ROWS, D_in), lambda i: (i, 0)),    # batched input rows
                pl.BlockSpec((L, P, P), lambda i: (0, 0, 0)),    # all weights, resident
                pl.BlockSpec((L, 1, P), lambda i: (0, 0, 0)),    # all biases, resident
            ],
            out_specs=pl.BlockSpec((TB, D_out), lambda i: (i, 0)),
        ),
        compiler_params=pltpu.CompilerParams(
            dimension_semantics=("parallel",),                   # batch axis independent
            vmem_limit_bytes=vmem_limit,
        ),
        cost_estimate=cost,
    )(x2d, w_pack, b_pack)

    # Drop batch padding; restore keepdim=True set axis.
    return out[:B].reshape(B, 1, D_out)


# -----------------------------------------------------------------------------
# Deterministic parameter init (PyTorch-Linear-style uniform) and reference
# -----------------------------------------------------------------------------
def init_mlp(key, input_size, hidden_size, num_hidden, output_size):
    sizes = [input_size] + [hidden_size] * num_hidden + [output_size]
    params = []
    for i in range(len(sizes) - 1):
        fan_in, fan_out = sizes[i], sizes[i + 1]
        key, kw, kb = jax.random.split(key, 3)
        bound = 1.0 / jnp.sqrt(fan_in)
        w = jax.random.uniform(kw, (fan_in, fan_out), jnp.float32, -bound, bound)
        b = jax.random.uniform(kb, (1, fan_out), jnp.float32, -bound, bound)
        params.append((w, b))
    return params, key


def reference_forward(knowledge, h1_params, h2_params):
    def mlp(x, params):
        for i, (w, b) in enumerate(params):
            x = x @ w + b
            if i < len(params) - 1:
                x = jnp.maximum(x, 0.0)
        return x

    ks = mlp(knowledge, h1_params)
    k = jnp.sum(ks, axis=1, keepdims=True)
    return mlp(k, h2_params)


# -----------------------------------------------------------------------------
if __name__ == "__main__":
    # config: knowledge_input_dim=16, knowledge_representation_dim=32,
    #         set_embedding_num_hidden=1
    B, N = 2, 8
    D_in, D_model, num_hidden = 16, 32, 1

    key = jax.random.PRNGKey(0)
    key, kx = jax.random.split(key)
    knowledge = jax.random.normal(kx, (B, N, D_in), dtype=jnp.float32)

    h1_params, key = init_mlp(key, D_in, D_model, num_hidden, D_model)
    h2_params, key = init_mlp(key, D_model, D_model, num_hidden, D_model)

    ref = reference_forward(knowledge, h1_params, h2_params)

    # Exact path (f32 MXU operands) — tight tolerance.
    out_f32 = set_embedding_forward(knowledge, h1_params, h2_params,
                                    mm_dtype=jnp.float32)
    out_f32 = jax.block_until_ready(out_f32)
    assert out_f32.shape == (B, 1, D_model), out_f32.shape
    assert jnp.allclose(out_f32, ref, atol=1e-4, rtol=1e-4), "f32 mismatch vs reference"

    # bf16-MXU path (default on v5e/v6e/v7x) — relaxed tolerance.
    out_bf16 = set_embedding_forward(knowledge, h1_params, h2_params,
                                     mm_dtype=jnp.bfloat16)
    out_bf16 = jax.block_until_ready(out_bf16)
    assert out_bf16.shape == (B, 1, D_model), out_bf16.shape
    assert jnp.allclose(out_bf16, ref, atol=1e-1, rtol=1e-1), "bf16 mismatch vs reference"

    # Larger batch exercises the multi-step (>=2, even) grid + batch-padding path.
    B2 = 40
    key, kx2 = jax.random.split(key)
    knowledge2 = jax.random.normal(kx2, (B2, N, D_in), dtype=jnp.float32)
    ref2 = reference_forward(knowledge2, h1_params, h2_params)
    out2 = set_embedding_forward(knowledge2, h1_params, h2_params,
                                 mm_dtype=jnp.float32)
    out2 = jax.block_until_ready(out2)
    assert out2.shape == (B2, 1, D_model), out2.shape
    assert jnp.allclose(out2, ref2, atol=1e-4, rtol=1e-4), "multi-step mismatch"

    print("KERNEL_OK")
</pallas_src>

<mosaic_0001>
module attributes {stable_mosaic.version = 11 : i64} {
  func.func @_set_embedding_kernel(%arg0: i32, %arg1: memref<16x16xf32, #tpu.memory_space<vmem>>, %arg2: memref<4x32x32xf32, #tpu.memory_space<vmem>>, %arg3: memref<4x1x32xf32, #tpu.memory_space<vmem>>, %arg4: memref<2x32xf32, #tpu.memory_space<vmem>>) attributes {dimension_semantics = [#tpu.dimension_semantics<parallel>], iteration_bounds = array<i64: 1>, scalar_prefetch = 0 : i64, scratch_operands = 0 : i64, tpu.core_type = #tpu.core_type<tc>, window_params = [{transform_indices = @transform_0, window_bounds = array<i64: 16, 16>}, {pipeline_mode = #tpu.pipeline_mode<synchronous>, transform_indices = @transform_1, window_bounds = array<i64: 4, 32, 32>}, {pipeline_mode = #tpu.pipeline_mode<synchronous>, transform_indices = @transform_2, window_bounds = array<i64: 4, 1, 32>}, {transform_indices = @transform_3, window_bounds = array<i64: 2, 32>}]} {
    %c0 = arith.constant 0 : index
    %c0_0 = arith.constant 0 : index
    %0 = vector.load %arg1[%c0, %c0_0] : memref<16x16xf32, #tpu.memory_space<vmem>>, vector<16x16xf32>
    %c0_1 = arith.constant 0 : index
    %c0_2 = arith.constant 0 : index
    %c0_3 = arith.constant 0 : index
    %1 = vector.load %arg2[%c0_1, %c0_2, %c0_3] : memref<4x32x32xf32, #tpu.memory_space<vmem>>, vector<1x32x32xf32>
    %2 = vector.shape_cast %1 : vector<1x32x32xf32> to vector<32x32xf32>
    %3 = vector.extract_strided_slice %2 {offsets = [0, 0], sizes = [16, 32], strides = [1, 1]} : vector<32x32xf32> to vector<16x32xf32>
    %cst = arith.constant dense<0.000000e+00> : vector<16x32xf32>
    %4 = tpu.matmul %0, %3, %cst {dimension_numbers = #tpu.dot_dimension_numbers<[1], [0], [0], [1], [0, 0, 1, 1], [], []>} : vector<16x16xf32>, vector<16x32xf32>, vector<16x32xf32> -> vector<16x32xf32>
    %c0_4 = arith.constant 0 : index
    %c0_5 = arith.constant 0 : index
    %c0_6 = arith.constant 0 : index
    %5 = vector.load %arg3[%c0_4, %c0_5, %c0_6] : memref<4x1x32xf32, #tpu.memory_space<vmem>>, vector<1x1x32xf32>
    %6 = vector.shape_cast %5 : vector<1x1x32xf32> to vector<1x32xf32>
    %7 = vector.broadcast %6 : vector<1x32xf32> to vector<16x32xf32>
    %8 = arith.addf %4, %7 : vector<16x32xf32>
    %cst_7 = arith.constant 0.000000e+00 : f32
    %9 = vector.broadcast %cst_7 : f32 to vector<16x32xf32>
    %10 = arith.maximumf %8, %9 : vector<16x32xf32>
    %c1 = arith.constant 1 : index
    %c0_8 = arith.constant 0 : index
    %c0_9 = arith.constant 0 : index
    %11 = vector.load %arg2[%c1, %c0_8, %c0_9] : memref<4x32x32xf32, #tpu.memory_space<vmem>>, vector<1x32x32xf32>
    %12 = vector.shape_cast %11 : vector<1x32x32xf32> to vector<32x32xf32>
    %cst_10 = arith.constant dense<0.000000e+00> : vector<16x32xf32>
    %13 = tpu.matmul %10, %12, %cst_10 {dimension_numbers = #tpu.dot_dimension_numbers<[1], [0], [0], [1], [0, 0, 1, 1], [], []>} : vector<16x32xf32>, vector<32x32xf32>, vector<16x32xf32> -> vector<16x32xf32>
    %c1_11 = arith.constant 1 : index
    %c0_12 = arith.constant 0 : index
    %c0_13 = arith.constant 0 : index
    %14 = vector.load %arg3[%c1_11, %c0_12, %c0_13] : memref<4x1x32xf32, #tpu.memory_space<vmem>>, vector<1x1x32xf32>
    %15 = vector.shape_cast %14 : vector<1x1x32xf32> to vector<1x32xf32>
    %16 = vector.broadcast %15 : vector<1x32xf32> to vector<16x32xf32>
    %17 = arith.addf %13, %16 : vector<16x32xf32>
    %18 = vector.shape_cast %17 : vector<16x32xf32> to vector<2x8x32xf32>
    %cst_14 = arith.constant dense<0.000000e+00> : vector<2x32xf32>
    %19 = vector.multi_reduction <add>, %18, %cst_14 [1] : vector<2x8x32xf32> to vector<2x32xf32>
    %c2 = arith.constant 2 : index
    %c0_15 = arith.constant 0 : index
    %c0_16 = arith.constant 0 : index
    %20 = vector.load %arg2[%c2, %c0_15, %c0_16] : memref<4x32x32xf32, #tpu.memory_space<vmem>>, vector<1x32x32xf32>
    %21 = vector.shape_cast %20 : vector<1x32x32xf32> to vector<32x32xf32>
    %cst_17 = arith.constant dense<0.000000e+00> : vector<2x32xf32>
    %22 = tpu.matmul %19, %21, %cst_17 {dimension_numbers = #tpu.dot_dimension_numbers<[1], [0], [0], [1], [0, 0, 1, 1], [], []>} : vector<2x32xf32>, vector<32x32xf32>, vector<2x32xf32> -> vector<2x32xf32>
    %c2_18 = arith.constant 2 : index
    %c0_19 = arith.constant 0 : index
    %c0_20 = arith.constant 0 : index
    %23 = vector.load %arg3[%c2_18, %c0_19, %c0_20] : memref<4x1x32xf32, #tpu.memory_space<vmem>>, vector<1x1x32xf32>
    %24 = vector.shape_cast %23 : vector<1x1x32xf32> to vector<1x32xf32>
    %25 = vector.broadcast %24 : vector<1x32xf32> to vector<2x32xf32>
    %26 = arith.addf %22, %25 : vector<2x32xf32>
    %cst_21 = arith.constant 0.000000e+00 : f32
    %27 = vector.broadcast %cst_21 : f32 to vector<2x32xf32>
    %28 = arith.maximumf %26, %27 : vector<2x32xf32>
    %c3 = arith.constant 3 : index
    %c0_22 = arith.constant 0 : index
    %c0_23 = arith.constant 0 : index
    %29 = vector.load %arg2[%c3, %c0_22, %c0_23] : memref<4x32x32xf32, #tpu.memory_space<vmem>>, vector<1x32x32xf32>
    %30 = vector.shape_cast %29 : vector<1x32x32xf32> to vector<32x32xf32>
    %cst_24 = arith.constant dense<0.000000e+00> : vector<2x32xf32>
    %31 = tpu.matmul %28, %30, %cst_24 {dimension_numbers = #tpu.dot_dimension_numbers<[1], [0], [0], [1], [0, 0, 1, 1], [], []>} : vector<2x32xf32>, vector<32x32xf32>, vector<2x32xf32> -> vector<2x32xf32>
    %c3_25 = arith.constant 3 : index
    %c0_26 = arith.constant 0 : index
    %c0_27 = arith.constant 0 : index
    %32 = vector.load %arg3[%c3_25, %c0_26, %c0_27] : memref<4x1x32xf32, #tpu.memory_space<vmem>>, vector<1x1x32xf32>
    %33 = vector.shape_cast %32 : vector<1x1x32xf32> to vector<1x32xf32>
    %34 = vector.broadcast %33 : vector<1x32xf32> to vector<2x32xf32>
    %35 = arith.addf %31, %34 : vector<2x32xf32>
    %c0_28 = arith.constant 0 : index
    %c0_29 = arith.constant 0 : index
    %36 = vector.load %arg4[%c0_28, %c0_29] : memref<2x32xf32, #tpu.memory_space<vmem>>, vector<2x32xf32>
    tpu.vector_store %arg4[%c0_28, %c0_29], %35 {strides = array<i32>} : memref<2x32xf32, #tpu.memory_space<vmem>>, vector<2x32xf32>,
    return
  }
  func.func @transform_0(%arg0: i32) -> (i32, i32) {
    %c0_i32 = arith.constant 0 : i32
    %c0_i32_0 = arith.constant 0 : i32
    return %arg0, %c0_i32 : i32, i32
  }
  func.func @transform_1(%arg0: i32) -> (i32, i32, i32) {
    %c0_i32 = arith.constant 0 : i32
    %c0_i32_0 = arith.constant 0 : i32
    %c0_i32_1 = arith.constant 0 : i32
    %c0_i32_2 = arith.constant 0 : i32
    return %c0_i32, %c0_i32_0, %c0_i32_1 : i32, i32, i32
  }
  func.func @transform_2(%arg0: i32) -> (i32, i32, i32) {
    %c0_i32 = arith.constant 0 : i32
    %c0_i32_0 = arith.constant 0 : i32
    %c0_i32_1 = arith.constant 0 : i32
    %c0_i32_2 = arith.constant 0 : i32
    return %c0_i32, %c0_i32_0, %c0_i32_1 : i32, i32, i32
  }
  func.func @transform_3(%arg0: i32) -> (i32, i32) {
    %c0_i32 = arith.constant 0 : i32
    %c0_i32_0 = arith.constant 0 : i32
    return %arg0, %c0_i32 : i32, i32
  }
}

</mosaic_0001>

<bundles_post_ra>
// kernel: tpu_custom_call.1
= control target key start
LH: loop header
LB: loop body
LE: loop exit
PB: predicated region body
PF: predicated region fallthrough
CT: control target
= control target key end

     0   :  { %8 = vsyncpa [#allocation3], 0  ;;  %s700_s0 = inlined_call_operand.hbm [shape: f32[16,16], index: 0, kind: input, shape index: {}]   ;;  %s701_s1 = inlined_call_operand.hbm [shape: f32[4,32,32], index: 1, kind: input, shape index: {}]   ;;  %s702_s2 = inlined_call_operand.vmem [shape: f32[4,1,32], index: 2, kind: input, shape index: {}]   ;;  %s703_s3 = inlined_call_operand.hbm [shape: f32[2,32], index: 3, kind: output, shape index: {}]  }
   0x1   :  { %9 = vsyncpa [#allocation6], 0 }
   0x2   :  { %10 = vsyncpa [#allocation4], 0  ;;  %s618_s12 = smov [#allocation2]   ;;  %s546_s16 = scalar_lea.hbm %s700_s0, 256 }
   0x3   :  { %s16_s13 = sshll.u32 %s618_s12, 4  ;;  %p547_p0 = scmp.ne.s32.totalorder %s700_s0, %s546_s16  ;;  %s17_s13 = int_to_ptr.vmem [resolvable:$true] %s16_s13 }
   0x4   :  { %p550_p1 = scmp.lt.u32.totalorder %s546_s16, %s700_s0 }
   0x6   :  { %p552_p2 = pnand %p550_p1, %p547_p0 }
   0x8   :  { %555 = shalt.err (!%p552_p2)
}
   0x9   :  { %s556_s21 = scalar_lea.vmem %s17_s13, 256  ;;  %p561_p4 = scmp.lt.s32.totalorder %s17_s13, %s17_s13 }
   0xa   :  { %p557_p3 = scmp.ne.s32.totalorder %s17_s13, %s556_s21  ;;  %p562_p5 = scmp.lt.s32.totalorder %s556_s21, %s556_s21 }
   0xc   :  { %p563_p6 = por %p562_p5, %p561_p4 }
   0xe   :  { %p564_p7 = pnand %p563_p6, %p557_p3 }
  0x10   :  { %567 = shalt.err (!%p564_p7)
}
  0x11   :  { %s619_s22 = smov 128   ;;  %s620_s23 = smov 8  }
  0x12   :  { %22 = dma.hbm_to_vmem [thread:$0]  %s700_s0, 256, %s17_s13, [#allocation3], %s619_s22, %s619_s22, %s620_s23  }
  0x13   :  { %s621_s26 = smov [#allocation5]   ;;  %s568_s30 = scalar_lea.hbm %s701_s1, 2048 }
  0x14   :  { %s28_s27 = sshll.u32 %s621_s26, 4  ;;  %p569_p8 = scmp.ne.s32.totalorder %s701_s1, %s568_s30  ;;  %s29_s27 = int_to_ptr.vmem [resolvable:$true] %s28_s27 }
  0x15   :  { %p572_p9 = scmp.lt.u32.totalorder %s568_s30, %s701_s1 }
  0x17   :  { %p574_p10 = pnand %p572_p9, %p569_p8 }
  0x19   :  { %577 = shalt.err (!%p574_p10)
}
  0x1a   :  { %s578_s8 = scalar_lea.vmem %s29_s27, 2048  ;;  %p583_p12 = scmp.lt.s32.totalorder %s29_s27, %s29_s27 }
  0x1b   :  { %p579_p11 = scmp.ne.s32.totalorder %s29_s27, %s578_s8  ;;  %p584_p13 = scmp.lt.s32.totalorder %s578_s8, %s578_s8 }
  0x1d   :  { %p585_p0 = por %p584_p13, %p583_p12 }
  0x1f   :  { %p586_p1 = pnand %p585_p0, %p579_p11 }
  0x21   :  { %589 = shalt.err (!%p586_p1)
}
  0x22   :  { %34 = dma.hbm_to_vmem [thread:$0]  %s701_s1, 2048, %s29_s27, [#allocation6], %s619_s22, %s619_s22, %s620_s23  }
  0x23   :  { %612 = dma.done.wait [#allocation3], 256  }
  0x24   :  { %613 = vsyncadd [#allocation3], 4294967040 }
  0x25   :  { %614 = dma.done.wait [#allocation6], 2048  }
  0x26   :  { %615 = vsyncadd [#allocation6], 4294965248  ;;  %vm54_vm0 = vcmask 130048   ;;  %v45_v0 = vld [vmem:[#allocation5] sm:$0xff]  ;;  %v46_v1 = vld [vmem:[#allocation5 + $0x8] sm:$0xff]  ;;  %vm151_vm1 = vcmask 261120  }
  0x27   :  { %v43_v2 = vld [vmem:[#allocation2] sm:$0xff]  ;;  %v514_v3 = vpack.c.bf16 %v46_v1, %v45_v0  ;;  %v139_v4 = vld [vmem:[#allocation5 + $0x20] sm:$0xff]  ;;  %v140_v5 = vld [vmem:[#allocation5 + $0x28] sm:$0xff]  ;;  %v622_v21 = vmov 0.0|0.0   ;;  %vm623_vm2 = vmmov 0   ;;  %v624_v25 = vmov 0.0  }
  0x28   :  { %478 = vmatprep.mubr.msk.f32.mxu0 %vm54_vm0, %v43_v2  ;;  %v518_v6 = vpack.c.bf16 %v140_v5, %v139_v4  ;;  %v44_v7 = vld [vmem:[#allocation2 + $0x8] sm:$0xff]  ;;  %v141_v8 = vld [vmem:[#allocation5 + $0x30] sm:$0xff]  ;;  %v248_v18 = vld [vmem:[#allocation5 + $0x40] sm:$0xff]  ;;  %vm262_vm3 = vcmask 1041409   ;;  %s625_s17 = smov [#allocation7]   ;;  %vm423_vm4 = vcmask 254976  }
  0x29   :  { %515 = vmatprep.subr.bf16.mxu0 %v514_v3  ;;  %v142_v9 = vld [vmem:[#allocation5 + $0x38] sm:$0xff]  ;;  %v441_v11 = vld [vmem:[%s702_s2] ss:$0 sm:$0xff]  ;;  %v249_v19 = vld [vmem:[#allocation5 + $0x48] sm:$0xff]  ;;  %s431_s18 = sshll.u32 %s625_s17, 4  ;;  %s432_s18 = int_to_ptr.vmem [resolvable:$true] %s431_s18 }
  0x2a   :  { %517 = vmatpush3.bf16.msra.mxu0 %v514_v3  ;;  %519 = vmatprep.subr.bf16.mxu1 %v518_v6  ;;  %v522_v10 = vpack.c.bf16 %v142_v9, %v141_v8  ;;  %v527_v20 = vpack.c.bf16 %v249_v19, %v248_v18  ;;  %v250_v22 = vld [vmem:[#allocation5 + $0x50] sm:$0xff]  ;;  %v251_v23 = vld [vmem:[#allocation5 + $0x58] sm:$0xff]  ;;  %v338_v26 = vld [vmem:[#allocation5 + $0x60] sm:$0xff]  ;;  %s590_s19 = scalar_lea.vmem %s432_s18, 32  ;;  %p595_p3 = scmp.lt.s32.totalorder %s432_s18, %s432_s18 }
  0x2b   :  { %521 = vmatpush3.bf16.msra.mxu1 %v518_v6  ;;  %526 = vmatprep.subr.bf16.mxu0 %v622_v21  ;;  %v530_v24 = vpack.c.bf16 %v251_v23, %v250_v22  ;;  %v339_v27 = vld [vmem:[#allocation5 + $0x68] sm:$0xff]  ;;  %v445_v29 = vld [vmem:[%s702_s2 + $0x1] ss:$0 sm:$0xff]  ;;  %v341_v50 = vld [vmem:[#allocation5 + $0x78] sm:$0xff]  ;;  %p591_p2 = scmp.ne.s32.totalorder %s432_s18, %s590_s19  ;;  %p596_p4 = scmp.lt.s32.totalorder %s590_s19, %s590_s19 }
  0x2c   :  { %523 = vmatprep.subr.bf16.mxu1 %v522_v10  ;;  %v533_v28 = vpack.c.bf16 %v339_v27, %v338_v26  ;;  %v340_v49 = vld [vmem:[#allocation5 + $0x70] sm:$0xff] }
  0x2d   :  { %479 = vmatmul.mubr.msk.f32.vlgmr.msra.gmra.mrb[0].mxu0 %vm54_vm0, %v44_v7  ;;  %v536_v51 = vpack.c.bf16 %v341_v50, %v340_v49  ;;  %v449_v52 = vld [vmem:[%s702_s2 + $0x2] ss:$0 sm:$0xff]  ;;  %v452_v57 = vld [vmem:[%s702_s2 + $0x3] ss:$0 sm:$0xff]  ;;  %p597_p5 = por %p596_p4, %p595_p3 }
  0x2e   :  { %528 = vmatpush3.bf16.msra.mxu0 %v527_v20  ;;  %500 = vmatprep.mubr.msk.f32.mxu0 %vm623_vm2, %v624_v25 }
  0x2f   :  { %525 = vmatpush3.bf16.msra.mxu1 %v522_v10  ;;  %529 = vmatprep.subr.bf16.mxu0 %v622_v21  ;;  %p598_p6 = pnand %p597_p5, %p591_p2 }
  0x30   :  { %532 = vmatprep.subr.bf16.mxu1 %v622_v21 }
  0x32   :  { %531 = vmatpush3.bf16.msra.mxu0 %v530_v24 }
 0x100   :  { %v480_v12 = vpop.f32.mrb[0].mxu0 }
 0x101   :  { %v133_v13 = vadd.f32 %v480_v12, %v441_v11  ;;  %v127_v14 = vpop.f32.mrb[1].mxu0 }
 0x102   :  { %v128_v15 = vadd.f32 %v441_v11, %v127_v14 }
 0x103   :  { %v137_v17 = vmax.f32 %v133_v13, 0.0 }
 0x104   :  { %v136_v16 = vmax.f32 %v128_v15, 0.0 }
 0x106   :  { %489 = vmatprep.mubr.msk.f32.mxu1 %vm151_vm1, %v136_v16 }
 0x107   :  { %490 = vmatmul.mubr.msk.f32.vlgmr.msra.gmra.mrb[0].mxu1 %vm151_vm1, %v137_v17 }
 0x108   :  { %511 = vmatprep.mubr.msk.f32.mxu1 %vm623_vm2, %v624_v25  ;;  %534 = vmatpush3.bf16.msra.mxu1 %v533_v28 }
 0x109   :  { %535 = vmatprep.subr.bf16.mxu1 %v622_v21 }
 0x10c   :  { %537 = vmatpush3.bf16.msra.mxu1 %v536_v51 }
 0x1da   :  { %v491_v30 = vpop.f32.mrb[0].mxu1 }
 0x1db   :  { %v230_v31 = vadd.f32 %v491_v30, %v445_v29  ;;  %v224_v32 = vpop.f32.mrb[1].mxu1 }
 0x1dc   :  { %v225_v33 = vadd.f32 %v445_v29, %v224_v32 }
 0x1dd   :  { %v240_v34 = vsel %vm151_vm1, %v230_v31, 0.0 }
 0x1de   :  { %v241_v35 = vrot.slane %v240_v34, 4  ;;  %v233_v36 = vsel %vm151_vm1, %v225_v33, 0.0 }
 0x1df   :  { %v234_v37 = vrot.slane %v233_v36, 4 }
 0x1e0   :  { %v242_v38 = vadd.f32 %v241_v35, %v240_v34 }
 0x1e1   :  { %v235_v39 = vadd.f32 %v234_v37, %v233_v36 }
 0x1e2   :  { %v243_v40 = vrot.slane %v242_v38, 2 }
 0x1e3   :  { %v236_v41 = vrot.slane %v235_v39, 2 }
 0x1e4   :  { %v244_v42 = vadd.f32 %v243_v40, %v242_v38 }
 0x1e5   :  { %v237_v43 = vadd.f32 %v236_v41, %v235_v39 }
 0x1e6   :  { %v245_v44 = vrot.slane %v244_v42, 1 }
 0x1e7   :  { %v238_v45 = vrot.slane %v237_v43, 1 }
 0x1e8   :  { %v246_v46 = vadd.f32 %v245_v44, %v244_v42 }
 0x1e9   :  { %v239_v47 = vadd.f32 %v238_v45, %v237_v43 }
 0x1eb   :  { %v263_v48 = vsel %vm262_vm3, %v246_v46, %v239_v47 }
 0x1ec   :  { %501 = vmatmul.mubr.msk.f32.vlgmr.msra.gmra.mrb[2].mxu0 %vm151_vm1, %v263_v48 }
 0x2bf   :  { %v332_v53 = vpop.f32.mrb[2].mxu0 }
 0x2c0   :  { %v333_v54 = vadd.f32 %v449_v52, %v332_v53  ;;  %v502_v55 = vpop.f32.mrb[3].mxu0 }
 0x2c2   :  { %v336_v56 = vmax.f32 %v333_v54, 0.0 }
 0x2c4   :  { %512 = vmatmul.mubr.msk.f32.vlgmr.msra.gmra.mrb[2].mxu1 %vm151_vm1, %v336_v56 }
 0x397   :  { %v419_v58 = vpop.f32.mrb[2].mxu1 }
 0x398   :  { %v420_v59 = vadd.f32 %v452_v57, %v419_v58  ;;  %v513_v60 = vpop.f32.mrb[3].mxu1 }
 0x39a   :  { %424 = vst.msk [vmem:[#allocation7] sm:$0x3] %vm423_vm4, %v420_v59 }
 0x39b   :  { %601 = shalt.err (!%p598_p6)
}
 0x39c   :  { %s602_s22 = scalar_lea.hbm %s703_s3, 32 }
 0x39d   :  { %p603_p7 = scmp.ne.s32.totalorder %s703_s3, %s602_s22  ;;  %p606_p8 = scmp.lt.u32.totalorder %s602_s22, %s703_s3 }
 0x39f   :  { %p608_p9 = pnand %p606_p8, %p603_p7 }
 0x3a1   :  { %611 = shalt.err (!%p608_p9)
}
 0x3a2   :  { %434 = dma.vmem_to_hbm [thread:$0]  %s432_s18, 32, %s703_s3, [#allocation4]  }
 0x3a3   :  { %616 = dma.done.wait [#allocation4], 32  }
 0x3a4   :  { %617 = vsyncadd [#allocation4], 4294967264 }
 0x3a5   :  { %438 = vsyncpa [#allocation3], 1 }
 0x3a6   :  { %439 = vsyncpa [#allocation6], 1 }
 0x3a7   :  { %440 = vsyncpa [#allocation4], 1 }

</bundles_post_ra>
